<compile_context>
chip_gen: v5e
topology: v5e:2x2
jax: 0.10.0
libtpu: 0.0.40
codegen_flags: <defaults>
</compile_context>

<pallas_src>
import functools

import jax
import jax.numpy as jnp
from jax.experimental import pallas as pl
from jax.experimental.pallas import tpu as pltpu

_LANES = 128
_ACC_ROWS = 32          # resident accumulator sublanes per core
_ROW_ALIGN = 32         # multiple of every dtype's sublane granularity & _ACC_ROWS
_MAX_TILE_ROWS = 16384  # hard cap: 8 MiB per f32 stream per pipeline buffer


def _l1_kernel(*refs, has_mask: bool, block_rows: int, rows: int,
               steps_per_core: int, needs_row_mask: bool):
    if has_mask:
        t_ref, p_ref, m_ref, sum_ref, cnt_ref = refs
    else:
        t_ref, p_ref, sum_ref, cnt_ref = refs
        m_ref = None

    # Zero this core's resident accumulators at the start of its block sweep.
    @pl.when(pl.program_id(1) == 0)
    def _():
        sum_ref[...] = jnp.zeros_like(sum_ref)
        cnt_ref[...] = jnp.zeros_like(cnt_ref)

    # Inputs arrive in native dtype; cast on-chip (hidden under HBM DMA).
    t = t_ref[...].astype(jnp.float32)
    p = p_ref[...].astype(jnp.float32)

    valid = t > 0.0
    if m_ref is not None:
        m = m_ref[...]
        valid = jnp.logical_and(valid, m if m.dtype == jnp.bool_ else m != 0)

    adiff = jnp.abs(t - p)

    def accumulate(v):
        d = jnp.where(v, adiff, 0.0)
        c = v.astype(jnp.float32)
        # (block_rows,128)->(-1,32,128) splits the sublane dim on (8,128)-tile
        # boundaries, so it should be a free relayout; the sums are lane/
        # sublane-parallel VPU adds onto the resident accumulators.
        # TODO(synk): confirm via pl.lower_as_mlir that Mosaic doesn't
        # materialize the reshape; if it does, switch to a fori_loop over
        # ref[pl.ds(r*_ACC_ROWS, _ACC_ROWS), :] slices.
        sum_ref[...] += d.reshape(-1, _ACC_ROWS, _LANES).sum(axis=0)
        cnt_ref[...] += c.reshape(-1, _ACC_ROWS, _LANES).sum(axis=0)

    if needs_row_mask:
        blk = pl.program_id(0) * steps_per_core + pl.program_id(1)
        block_start = blk * block_rows
        is_full = block_start + block_rows <= rows

        @pl.when(is_full)
        def _():
            accumulate(valid)                      # fast path: no row mask

        @pl.when(jnp.logical_not(is_full))
        def _():
            # Partial (or clamped overflow) block: mask rows past the true row
            # count so out-of-bounds garbage never contributes.
            limit = rows - block_start             # scalar, may be <= 0
            row = jax.lax.broadcasted_iota(jnp.int32, valid.shape, 0)
            accumulate(jnp.logical_and(valid, row < limit))
    else:
        accumulate(valid)


def l1_loss(target, pred, mask=None, *, max_block_rows=_MAX_TILE_ROWS):
    """Masked L1 loss. target/pred: same shape (e.g. NCHW). Returns scalar f32."""
    assert target.shape == pred.shape, "inconsistent dimensions"
    if mask is not None:
        assert mask.shape == target.shape, "inconsistent mask dimensions"

    # --- glue: flatten (copy-free bitcast reshape for contiguous inputs) ---
    t_flat = jnp.ravel(target)
    p_flat = jnp.ravel(pred)
    m_flat = jnp.ravel(mask) if mask is not None else None

    n = t_flat.shape[0]
    rem = n % _LANES
    if rem:
        # TODO(synk): replace this pad (an extra HBM pass per input for
        # non-lane-aligned sizes) with an in-kernel lane mask on the last
        # block. Padded targets are 0, fail `target > 0`, never contribute.
        pad = _LANES - rem
        t_flat = jnp.pad(t_flat, (0, pad))
        p_flat = jnp.pad(p_flat, (0, pad))
        if m_flat is not None:
            m_flat = jnp.pad(m_flat, (0, pad))

    rows = t_flat.shape[0] // _LANES
    inputs = [t_flat.reshape(rows, _LANES), p_flat.reshape(rows, _LANES)]
    if m_flat is not None:
        inputs.append(m_flat.reshape(rows, _LANES))   # native dtype (bool ok)

    # --- tile sizing: biggest block that fits the scoped-VMEM budget --------
    bytes_per_row = sum(_LANES * jnp.dtype(x.dtype).itemsize for x in inputs)
    try:
        vmem_cap = pltpu.get_tpu_info().vmem_capacity_bytes
    except Exception:
        vmem_cap = 64 * 1024 * 1024        # v7x per-TC physical; safe floor
    vmem_limit = int(min((vmem_cap * 3) // 4, 96 * 1024 * 1024))
    pipeline_budget = vmem_limit - 2 * 1024 * 1024    # headroom: accs + scratch
    vmem_rows = max(
        _ROW_ALIGN,
        (pipeline_budget // (2 * bytes_per_row)) // _ROW_ALIGN * _ROW_ALIGN)
    rows_aligned = ((rows + _ROW_ALIGN - 1) // _ROW_ALIGN) * _ROW_ALIGN
    cap_rows = max(_ROW_ALIGN, (max_block_rows // _ROW_ALIGN) * _ROW_ALIGN)
    block_rows = min(rows_aligned, vmem_rows, cap_rows)

    # --- split row blocks across (up to) two TensorCores ---------------------
    num_blocks = pl.cdiv(rows, block_rows)
    num_cores = 2 if num_blocks >= 2 else 1
    steps = pl.cdiv(num_blocks, num_cores)
    needs_row_mask = (num_cores * steps * block_rows) > rows

    def tile_map(c, i):
        # Clamp so overflow steps (odd block counts) re-read the last valid
        # block; their computed row indices are >= rows and get fully masked.
        return (jnp.minimum(c * steps + i, num_blocks - 1), 0)

    tile_spec = pl.BlockSpec((block_rows, _LANES), tile_map)
    acc_spec = pl.BlockSpec((_ACC_ROWS, _LANES), lambda c, i: (c, 0))

    kernel = functools.partial(
        _l1_kernel,
        has_mask=(m_flat is not None),
        block_rows=block_rows,
        rows=rows,
        steps_per_core=steps,
        needs_row_mask=needs_row_mask,
    )

    in_bytes = sum(x.size * jnp.dtype(x.dtype).itemsize for x in inputs)
    out_bytes = 2 * num_cores * _ACC_ROWS * _LANES * 4

    s, c = pl.pallas_call(
        kernel,
        out_shape=(
            jax.ShapeDtypeStruct((num_cores * _ACC_ROWS, _LANES), jnp.float32),
            jax.ShapeDtypeStruct((num_cores * _ACC_ROWS, _LANES), jnp.float32),
        ),
        grid_spec=pltpu.PrefetchScalarGridSpec(
            num_scalar_prefetch=0,
            grid=(num_cores, steps),
            in_specs=[tile_spec] * len(inputs),
            out_specs=(acc_spec, acc_spec),
        ),
        compiler_params=pltpu.CompilerParams(
            dimension_semantics=("parallel", "arbitrary"),
            vmem_limit_bytes=vmem_limit,
        ),
        cost_estimate=pl.CostEstimate(
            flops=int(5 * rows * _LANES),
            transcendentals=0,
            bytes_accessed=int(in_bytes + out_bytes),
        ),
    )(*inputs)

    # Single final cross-lane / cross-core reduce + divide (tiny, pure JAX).
    # 0/0 -> NaN, matching torch .mean() over an empty selection.
    return (jnp.sum(s) / jnp.sum(c)).astype(jnp.float32)


if __name__ == "__main__":
    key = jax.random.PRNGKey(0)
    k1, k2, k3 = jax.random.split(key, 3)

    def ref_loss(t, p, m=None):
        valid = t > 0
        if m is not None:
            valid = jnp.logical_and(valid, m != 0)
        diff = jnp.where(valid, jnp.abs(t - p), 0.0)
        return jnp.sum(diff) / jnp.sum(valid.astype(jnp.float32))

    # NCHW inputs, small shapes.
    B, C, H, W = 2, 4, 16, 16
    target = jax.random.normal(k1, (B, C, H, W), dtype=jnp.float32)
    pred = jax.random.normal(k2, (B, C, H, W), dtype=jnp.float32)
    mask = (jax.random.uniform(k3, (B, C, H, W)) > 0.3).astype(jnp.float32)

    # 1) masked path (float mask)
    loss = l1_loss(target, pred, mask)
    jax.block_until_ready(loss)
    assert jnp.allclose(loss, ref_loss(target, pred, mask),
                        rtol=1e-5, atol=1e-5), (loss, ref_loss(target, pred, mask))

    # 2) unmasked path (2-stream kernel variant: no synthetic mask stream)
    loss_nm = l1_loss(target, pred)
    jax.block_until_ready(loss_nm)
    assert jnp.allclose(loss_nm, ref_loss(target, pred),
                        rtol=1e-5, atol=1e-5), (loss_nm, ref_loss(target, pred))

    # 3) bool mask passed straight through (no wrapper-side astype pass)
    m_bool = jax.random.uniform(k3, (B, C, H, W)) > 0.3
    loss_b = l1_loss(target, pred, m_bool)
    jax.block_until_ready(loss_b)
    assert jnp.allclose(loss_b, ref_loss(target, pred, m_bool),
                        rtol=1e-5, atol=1e-5), (loss_b, ref_loss(target, pred, m_bool))

    # 4) small block size to exercise the 2-core split + partial trailing block
    t4 = jax.random.normal(k1, (2, 4, 40, 16), dtype=jnp.float32)   # rows = 40
    p4 = jax.random.normal(k2, (2, 4, 40, 16), dtype=jnp.float32)
    loss4 = l1_loss(t4, p4, max_block_rows=32)
    jax.block_until_ready(loss4)
    assert jnp.allclose(loss4, ref_loss(t4, p4),
                        rtol=1e-5, atol=1e-5), (loss4, ref_loss(t4, p4))

    # 5) odd block count: exercises the clamped overflow step on core 1
    t5 = jax.random.normal(k1, (2, 4, 36, 32), dtype=jnp.float32)   # rows = 72
    p5 = jax.random.normal(k2, (2, 4, 36, 32), dtype=jnp.float32)
    m5 = jax.random.uniform(k3, (2, 4, 36, 32)) > 0.5
    loss5 = l1_loss(t5, p5, m5, max_block_rows=32)
    jax.block_until_ready(loss5)
    assert jnp.allclose(loss5, ref_loss(t5, p5, m5),
                        rtol=1e-5, atol=1e-5), (loss5, ref_loss(t5, p5, m5))

    # 6) non-lane-aligned element count (pad fallback path)
    t6 = jax.random.normal(k1, (3, 5, 7, 11), dtype=jnp.float32)    # 1155 elems
    p6 = jax.random.normal(k2, (3, 5, 7, 11), dtype=jnp.float32)
    loss6 = l1_loss(t6, p6)
    jax.block_until_ready(loss6)
    assert jnp.allclose(loss6, ref_loss(t6, p6),
                        rtol=1e-5, atol=1e-5), (loss6, ref_loss(t6, p6))

    print("KERNEL_OK")
</pallas_src>

<mosaic_0001>
module attributes {stable_mosaic.version = 11 : i64} {
  func.func @_l1_kernel(%arg0: i32, %arg1: i32, %arg2: memref<32x128xf32, #tpu.memory_space<vmem>>, %arg3: memref<32x128xf32, #tpu.memory_space<vmem>>, %arg4: memref<32x128xf32, #tpu.memory_space<vmem>>, %arg5: memref<32x128xf32, #tpu.memory_space<vmem>>, %arg6: memref<32x128xf32, #tpu.memory_space<vmem>>) attributes {dimension_semantics = [#tpu.dimension_semantics<parallel>, #tpu.dimension_semantics<arbitrary>], iteration_bounds = array<i64: 1, 1>, scalar_prefetch = 0 : i64, scratch_operands = 0 : i64, tpu.core_type = #tpu.core_type<tc>, window_params = [{transform_indices = @transform_0, window_bounds = array<i64: 32, 128>}, {transform_indices = @transform_1, window_bounds = array<i64: 32, 128>}, {transform_indices = @transform_2, window_bounds = array<i64: 32, 128>}, {transform_indices = @transform_3, window_bounds = array<i64: 32, 128>}, {transform_indices = @transform_4, window_bounds = array<i64: 32, 128>}]} {
    %c0_i32 = arith.constant 0 : i32
    %0 = arith.cmpi eq, %arg1, %c0_i32 : i32
    %1 = arith.extui %0 : i1 to i32
    %c0_i32_0 = arith.constant 0 : i32
    %2 = arith.cmpi ne, %1, %c0_i32_0 : i32
    scf.if %2 {
      %cst_10 = arith.constant 0.000000e+00 : f32
      %23 = vector.broadcast %cst_10 : f32 to vector<32x128xf32>
      %c0_11 = arith.constant 0 : index
      %c0_12 = arith.constant 0 : index
      %24 = vector.load %arg5[%c0_11, %c0_12] : memref<32x128xf32, #tpu.memory_space<vmem>>, vector<32x128xf32>
      tpu.vector_store %arg5[%c0_11, %c0_12], %23 {strides = array<i32>} : memref<32x128xf32, #tpu.memory_space<vmem>>, vector<32x128xf32>,
      %cst_13 = arith.constant 0.000000e+00 : f32
      %25 = vector.broadcast %cst_13 : f32 to vector<32x128xf32>
      %c0_14 = arith.constant 0 : index
      %c0_15 = arith.constant 0 : index
      %26 = vector.load %arg6[%c0_14, %c0_15] : memref<32x128xf32, #tpu.memory_space<vmem>>, vector<32x128xf32>
      tpu.vector_store %arg6[%c0_14, %c0_15], %25 {strides = array<i32>} : memref<32x128xf32, #tpu.memory_space<vmem>>, vector<32x128xf32>,
    } else {
    }
    %c0 = arith.constant 0 : index
    %c0_1 = arith.constant 0 : index
    %3 = vector.load %arg2[%c0, %c0_1] : memref<32x128xf32, #tpu.memory_space<vmem>>, vector<32x128xf32>
    %c0_2 = arith.constant 0 : index
    %c0_3 = arith.constant 0 : index
    %4 = vector.load %arg3[%c0_2, %c0_3] : memref<32x128xf32, #tpu.memory_space<vmem>>, vector<32x128xf32>
    %cst = arith.constant 0.000000e+00 : f32
    %5 = vector.broadcast %cst : f32 to vector<32x128xf32>
    %6 = arith.cmpf ogt, %3, %5 : vector<32x128xf32>
    %c0_4 = arith.constant 0 : index
    %c0_5 = arith.constant 0 : index
    %7 = vector.load %arg4[%c0_4, %c0_5] : memref<32x128xf32, #tpu.memory_space<vmem>>, vector<32x128xf32>
    %cst_6 = arith.constant 0.000000e+00 : f32
    %8 = vector.broadcast %cst_6 : f32 to vector<32x128xf32>
    %9 = arith.cmpf one, %7, %8 : vector<32x128xf32>
    %10 = arith.andi %6, %9 : vector<32x128xi1>
    %11 = arith.subf %3, %4 : vector<32x128xf32>
    %12 = math.absf %11 : vector<32x128xf32>
    %c1_i32 = arith.constant 1 : i32
    %13 = arith.muli %arg0, %c1_i32 : i32
    %14 = arith.addi %13, %arg1 : i32
    %c32_i32 = arith.constant 32 : i32
    %15 = arith.muli %14, %c32_i32 : i32
    %c32_i32_7 = arith.constant 32 : i32
    %16 = arith.addi %15, %c32_i32_7 : i32
    %c16_i32 = arith.constant 16 : i32
    %17 = arith.cmpi sle, %16, %c16_i32 : i32
    %18 = arith.extui %17 : i1 to i32
    %c0_i32_8 = arith.constant 0 : i32
    %19 = arith.cmpi ne, %18, %c0_i32_8 : i32
    scf.if %19 {
      %cst_10 = arith.constant 0.000000e+00 : f32
      %23 = vector.broadcast %cst_10 : f32 to vector<32x128xf32>
      %24 = arith.select %10, %12, %23 : vector<32x128xi1>, vector<32x128xf32>
      %25 = arith.extui %10 : vector<32x128xi1> to vector<32x128xi32>
      %26 = arith.sitofp %25 : vector<32x128xi32> to vector<32x128xf32>
      %c0_11 = arith.constant 0 : index
      %c0_12 = arith.constant 0 : index
      %27 = vector.load %arg5[%c0_11, %c0_12] : memref<32x128xf32, #tpu.memory_space<vmem>>, vector<32x128xf32>
      %28 = vector.shape_cast %24 : vector<32x128xf32> to vector<1x32x128xf32>
      %cst_13 = arith.constant dense<0.000000e+00> : vector<32x128xf32>
      %29 = vector.multi_reduction <add>, %28, %cst_13 [0] : vector<1x32x128xf32> to vector<32x128xf32>
      %30 = arith.addf %27, %29 : vector<32x128xf32>
      %c0_14 = arith.constant 0 : index
      %c0_15 = arith.constant 0 : index
      %31 = vector.load %arg5[%c0_14, %c0_15] : memref<32x128xf32, #tpu.memory_space<vmem>>, vector<32x128xf32>
      tpu.vector_store %arg5[%c0_14, %c0_15], %30 {strides = array<i32>} : memref<32x128xf32, #tpu.memory_space<vmem>>, vector<32x128xf32>,
      %c0_16 = arith.constant 0 : index
      %c0_17 = arith.constant 0 : index
      %32 = vector.load %arg6[%c0_16, %c0_17] : memref<32x128xf32, #tpu.memory_space<vmem>>, vector<32x128xf32>
      %33 = vector.shape_cast %26 : vector<32x128xf32> to vector<1x32x128xf32>
      %cst_18 = arith.constant dense<0.000000e+00> : vector<32x128xf32>
      %34 = vector.multi_reduction <add>, %33, %cst_18 [0] : vector<1x32x128xf32> to vector<32x128xf32>
      %35 = arith.addf %32, %34 : vector<32x128xf32>
      %c0_19 = arith.constant 0 : index
      %c0_20 = arith.constant 0 : index
      %36 = vector.load %arg6[%c0_19, %c0_20] : memref<32x128xf32, #tpu.memory_space<vmem>>, vector<32x128xf32>
      tpu.vector_store %arg6[%c0_19, %c0_20], %35 {strides = array<i32>} : memref<32x128xf32, #tpu.memory_space<vmem>>, vector<32x128xf32>,
    } else {
    }
    %true = arith.constant true
    %20 = arith.xori %17, %true : i1
    %21 = arith.extui %20 : i1 to i32
    %c0_i32_9 = arith.constant 0 : i32
    %22 = arith.cmpi ne, %21, %c0_i32_9 : i32
    scf.if %22 {
      %c16_i32_10 = arith.constant 16 : i32
      %23 = arith.subi %c16_i32_10, %15 : i32
      %24 = tpu.iota {dimensions = array<i32: 0>} : vector<32x128xi32>
      %25 = vector.broadcast %23 : i32 to vector<32x128xi32>
      %26 = arith.cmpi slt, %24, %25 : vector<32x128xi32>
      %27 = arith.andi %10, %26 : vector<32x128xi1>
      %cst_11 = arith.constant 0.000000e+00 : f32
      %28 = vector.broadcast %cst_11 : f32 to vector<32x128xf32>
      %29 = arith.select %27, %12, %28 : vector<32x128xi1>, vector<32x128xf32>
      %30 = arith.extui %27 : vector<32x128xi1> to vector<32x128xi32>
      %31 = arith.sitofp %30 : vector<32x128xi32> to vector<32x128xf32>
      %c0_12 = arith.constant 0 : index
      %c0_13 = arith.constant 0 : index
      %32 = vector.load %arg5[%c0_12, %c0_13] : memref<32x128xf32, #tpu.memory_space<vmem>>, vector<32x128xf32>
      %33 = vector.shape_cast %29 : vector<32x128xf32> to vector<1x32x128xf32>
      %cst_14 = arith.constant dense<0.000000e+00> : vector<32x128xf32>
      %34 = vector.multi_reduction <add>, %33, %cst_14 [0] : vector<1x32x128xf32> to vector<32x128xf32>
      %35 = arith.addf %32, %34 : vector<32x128xf32>
      %c0_15 = arith.constant 0 : index
      %c0_16 = arith.constant 0 : index
      %36 = vector.load %arg5[%c0_15, %c0_16] : memref<32x128xf32, #tpu.memory_space<vmem>>, vector<32x128xf32>
      tpu.vector_store %arg5[%c0_15, %c0_16], %35 {strides = array<i32>} : memref<32x128xf32, #tpu.memory_space<vmem>>, vector<32x128xf32>,
      %c0_17 = arith.constant 0 : index
      %c0_18 = arith.constant 0 : index
      %37 = vector.load %arg6[%c0_17, %c0_18] : memref<32x128xf32, #tpu.memory_space<vmem>>, vector<32x128xf32>
      %38 = vector.shape_cast %31 : vector<32x128xf32> to vector<1x32x128xf32>
      %cst_19 = arith.constant dense<0.000000e+00> : vector<32x128xf32>
      %39 = vector.multi_reduction <add>, %38, %cst_19 [0] : vector<1x32x128xf32> to vector<32x128xf32>
      %40 = arith.addf %37, %39 : vector<32x128xf32>
      %c0_20 = arith.constant 0 : index
      %c0_21 = arith.constant 0 : index
      %41 = vector.load %arg6[%c0_20, %c0_21] : memref<32x128xf32, #tpu.memory_space<vmem>>, vector<32x128xf32>
      tpu.vector_store %arg6[%c0_20, %c0_21], %40 {strides = array<i32>} : memref<32x128xf32, #tpu.memory_space<vmem>>, vector<32x128xf32>,
    } else {
    }
    return
  }
  func.func @transform_0(%arg0: i32, %arg1: i32) -> (i32, i32) {
    %c1_i32 = arith.constant 1 : i32
    %0 = arith.muli %arg0, %c1_i32 : i32
    %1 = arith.addi %0, %arg1 : i32
    %c0_i32 = arith.constant 0 : i32
    %2 = arith.minsi %1, %c0_i32 : i32
    %c0_i32_0 = arith.constant 0 : i32
    %c0_i32_1 = arith.constant 0 : i32
    return %2, %c0_i32_0 : i32, i32
  }
  func.func @transform_1(%arg0: i32, %arg1: i32) -> (i32, i32) {
    %c1_i32 = arith.constant 1 : i32
    %0 = arith.muli %arg0, %c1_i32 : i32
    %1 = arith.addi %0, %arg1 : i32
    %c0_i32 = arith.constant 0 : i32
    %2 = arith.minsi %1, %c0_i32 : i32
    %c0_i32_0 = arith.constant 0 : i32
    %c0_i32_1 = arith.constant 0 : i32
    return %2, %c0_i32_0 : i32, i32
  }
  func.func @transform_2(%arg0: i32, %arg1: i32) -> (i32, i32) {
    %c1_i32 = arith.constant 1 : i32
    %0 = arith.muli %arg0, %c1_i32 : i32
    %1 = arith.addi %0, %arg1 : i32
    %c0_i32 = arith.constant 0 : i32
    %2 = arith.minsi %1, %c0_i32 : i32
    %c0_i32_0 = arith.constant 0 : i32
    %c0_i32_1 = arith.constant 0 : i32
    return %2, %c0_i32_0 : i32, i32
  }
  func.func @transform_3(%arg0: i32, %arg1: i32) -> (i32, i32) {
    %c0_i32 = arith.constant 0 : i32
    %c0_i32_0 = arith.constant 0 : i32
    return %arg0, %c0_i32 : i32, i32
  }
  func.func @transform_4(%arg0: i32, %arg1: i32) -> (i32, i32) {
    %c0_i32 = arith.constant 0 : i32
    %c0_i32_0 = arith.constant 0 : i32
    return %arg0, %c0_i32 : i32, i32
  }
}

</mosaic_0001>

<bundles_post_ra>
// kernel: tpu_custom_call.1
= control target key start
LH: loop header
LB: loop body
LE: loop exit
PB: predicated region body
PF: predicated region fallthrough
CT: control target
= control target key end

     0   :  { %10 = vsyncpa [#allocation3], 0  ;;  %s539_s0 = inlined_call_operand.hbm [shape: f32[16,128], index: 0, kind: input, shape index: {}]   ;;  %s540_s1 = inlined_call_operand.hbm [shape: f32[16,128], index: 1, kind: input, shape index: {}]   ;;  %s541_s2 = inlined_call_operand.hbm [shape: f32[16,128], index: 2, kind: input, shape index: {}]   ;;  %s542_s3 = inlined_call_operand.hbm [shape: f32[32,128], index: 3, kind: output, shape index: {0}]   ;;  %s543_s4 = inlined_call_operand.hbm [shape: f32[32,128], index: 4, kind: output, shape index: {1}]  }
   0x1   :  { %11 = vsyncpa [#allocation6], 0 }
   0x2   :  { %12 = vsyncpa [#allocation4], 0 }
   0x3   :  { %13 = vsyncpa [#allocation10], 0 }
   0x4   :  { %24 = vsyncadd [#allocation3], 256  ;;  %s29_s17 = sshll.u32 %s539_s0, 4  ;;  %s460_s18 = smov [#allocation2]   ;;  %s30_s17 = int_to_ptr.hbm [resolvable:$true] %s29_s17 }
   0x5   :  { %s31_s19 = sshll.u32 %s460_s18, 4  ;;  %s461_s20 = smov 128   ;;  %s32_s19 = int_to_ptr.vmem [resolvable:$true] %s31_s19 }
   0x6   :  { %s462_s21 = smov 8  }
   0x7   :  { %37 = dma.hbm_to_vmem [thread:$0]  %s30_s17, 256, %s32_s19, [#allocation3], %s461_s20, %s461_s20, %s462_s21  }
   0x8   :  { %48 = vsyncadd [#allocation6], 256  ;;  %s53_s24 = sshll.u32 %s540_s1, 4  ;;  %s463_s25 = smov [#allocation5]   ;;  %s54_s24 = int_to_ptr.hbm [resolvable:$true] %s53_s24 }
   0x9   :  { %s55_s26 = sshll.u32 %s463_s25, 4  ;;  %s56_s26 = int_to_ptr.vmem [resolvable:$true] %s55_s26 }
   0xa   :  { %61 = dma.hbm_to_vmem [thread:$0]  %s54_s24, 256, %s56_s26, [#allocation6], %s461_s20, %s461_s20, %s462_s21  }
   0xb   :  { %72 = vsyncadd [#allocation6], 256  ;;  %s77_s28 = sshll.u32 %s541_s2, 4  ;;  %s464_s29 = smov [#allocation7]   ;;  %s78_s28 = int_to_ptr.hbm [resolvable:$true] %s77_s28 }
   0xc   :  { %s79_s30 = sshll.u32 %s464_s29, 4  ;;  %s80_s30 = int_to_ptr.vmem [resolvable:$true] %s79_s30 }
   0xd   :  { %85 = dma.hbm_to_vmem [thread:$0]  %s78_s28, 256, %s80_s30, [#allocation6], %s461_s20, %s461_s20, %s462_s21  }
   0xe   :  { %452 = dma.done.wait [#allocation3], 512  }
   0xf   :  { %453 = vsyncadd [#allocation3], 4294966784 }
  0x10   :  { %454 = dma.done.wait [#allocation6], 1024  }
  0x11   :  { %455 = vsyncadd [#allocation6], 4294966272  ;;  %v465_v0 = vmov 0.0   ;;  %v128_v1 = vld [vmem:[#allocation2] sm:$0xff]  ;;  %v129_v5 = vld [vmem:[#allocation2 + $0x8] sm:$0xff]  ;;  %s466_s1 = smov [#allocation9]  }
  0x12   :  { %256 = vst [vmem:[#allocation8 + $0x10] sm:$0xff] %v465_v0  ;;  %v132_v2 = vld [vmem:[#allocation5] sm:$0xff]  ;;  %vm136_vm0 = vcmp.gt.f32.partialorder %v128_v1, 0.0  ;;  %v133_v6 = vld [vmem:[#allocation5 + $0x8] sm:$0xff]  ;;  %vm137_vm3 = vcmp.gt.f32.partialorder %v129_v5, 0.0  ;;  %s291_s2 = sshll.u32 %s466_s1, 4  ;;  %s292_s2 = int_to_ptr.vmem [resolvable:$true] %s291_s2 }
  0x13   :  { %257 = vst [vmem:[#allocation8 + $0x18] sm:$0xff] %v465_v0  ;;  %v140_v3 = vld [vmem:[#allocation7] sm:$0xff]  ;;  %v152_v4 = vsub.f32 %v128_v1, %v132_v2  ;;  %v141_v7 = vld [vmem:[#allocation7 + $0x8] sm:$0xff]  ;;  %v153_v9 = vsub.f32 %v129_v5, %v133_v6  ;;  %s293_s7 = sshll.u32 %s543_s4, 4  ;;  %s467_s8 = smov [#allocation8]   ;;  %s294_s7 = int_to_ptr.hbm [resolvable:$true] %s293_s7 }
  0x14   :  { %272 = vst [vmem:[#allocation9 + $0x10] sm:$0xff] %v465_v0  ;;  %vm144_vm1 = vcmp.ne.f32.partialorder %v140_v3, 0.0  ;;  %vm145_vm4 = vcmp.ne.f32.partialorder %v141_v7, 0.0  ;;  %s278_s9 = sshll.u32 %s467_s8, 4  ;;  %s280_s12 = sshll.u32 %s542_s3, 4  ;;  %s279_s9 = int_to_ptr.vmem [resolvable:$true] %s278_s9  ;;  %s281_s12 = int_to_ptr.hbm [resolvable:$true] %s280_s12 }
  0x15   :  { %273 = vst [vmem:[#allocation9 + $0x18] sm:$0xff] %v465_v0  ;;  %vm511_vm2 = vmand %vm136_vm0, %vm144_vm1  ;;  %v156_v10 = vand.u32 2147483647, %v152_v4  ;;  %v157_v13 = vand.u32 2147483647, %v153_v9 }
  0x16   :  { %vm518_vm5 = vmand %vm137_vm3, %vm145_vm4  ;;  %v322_v12 = vsel %vm511_vm2, 1.0, %v465_v0 }
  0x17   :  { %v323_v14 = vsel %vm518_vm5, 1.0, %v465_v0  ;;  %v230_v15 = vsel %vm511_vm2, %v156_v10, 0.0  ;;  %v231_v16 = vsel %vm518_vm5, %v157_v13, 0.0  ;;  %270 = vst [vmem:[#allocation9] sm:$0xff] %v322_v12 }
  0x18   :  { %271 = vst [vmem:[#allocation9 + $0x8] sm:$0xff] %v323_v14 }
  0x19   :  { %254 = vst [vmem:[#allocation8] sm:$0xff] %v230_v15  ;;  %299 = dma.vmem_to_hbm [thread:$0]  %s292_s2, 512, %s294_s7, [#allocation10], %s461_s20, %s461_s20, %s462_s21  }
  0x1a   :  { %255 = vst [vmem:[#allocation8 + $0x8] sm:$0xff] %v231_v16 }
  0x1b   :  { %286 = dma.vmem_to_hbm [thread:$0]  %s279_s9, 512, %s281_s12, [#allocation4], %s461_s20, %s461_s20, %s462_s21  }
  0x1c   :  { %456 = dma.done.wait [#allocation4], 512  }
  0x1d   :  { %457 = vsyncadd [#allocation4], 4294966784 }
  0x1e   :  { %458 = dma.done.wait [#allocation10], 512  }
  0x1f   :  { %459 = vsyncadd [#allocation10], 4294966784 }
  0x20   :  { %308 = vsyncpa [#allocation3], 1 }
  0x21   :  { %309 = vsyncpa [#allocation6], 1 }
  0x22   :  { %310 = vsyncpa [#allocation4], 1 }
  0x23   :  { %311 = vsyncpa [#allocation10], 1 }

</bundles_post_ra>
